<compile_context>
chip_gen: v5e
topology: v5e:2x2
jax: 0.10.0
libtpu: 0.0.40
codegen_flags: <defaults>
</compile_context>

<pallas_src>
import functools

import jax
import jax.numpy as jnp
from jax import lax
from jax.experimental import pallas as pl
from jax.experimental.pallas import tpu as pltpu


def _vq_kernel(x_ref, cbt_ref, cbg_ref, cbn_ref, o_ref, *,
               num_groups, group_dim, codebook_size, mm_dtype, gather_dtype):
    """One (TN, D) token tile.

    x_ref  : (TN, D)      token tile (D = num_groups * group_dim)
    cbt_ref: (G, Dg, K)   codebook, pre-transposed + pre-cast to matmul dtype
    cbg_ref: (G, K, Dg)   codebook in gather dtype (one-hot gather operand)
    cbn_ref: (G, K)       0.5 * ||c||^2 (fp32, from the matmul-dtype codebook)
    o_ref  : (TN, D)      quantized output tile
    """
    k = codebook_size
    x = x_ref[...]
    tn = x.shape[0]
    x_mm = x.astype(mm_dtype)                      # single cast, reused per group
    half_norms = cbn_ref[...]                      # (G, K) fp32
    col = lax.broadcasted_iota(jnp.int32, (tn, k), 1)   # shared across groups

    for g in range(num_groups):                    # static unroll, G is small
        lo = g * group_dim
        hi = lo + group_dim
        xg = x_mm[:, lo:hi]                        # (TN, Dg) static slice

        # score = x.c - 0.5*||c||^2 ;  argmin_k ||x-c||^2 == argmax_k score.
        # NN-oriented matmul: (TN, Dg) @ (Dg, K), K lane-dense, fp32 accumulate.
        score = lax.dot_general(
            xg, cbt_ref[g], (((1,), (0,)), ((), ())),
            preferred_element_type=jnp.float32) - half_norms[g:g + 1, :]

        # argmax with first-index tie-break (== torch.argmin on the distance).
        max_s = jnp.max(score, axis=-1, keepdims=True)           # (TN, 1)
        idx = jnp.min(jnp.where(score >= max_s, col, k),
                      axis=-1, keepdims=True)                     # (TN, 1)

        # Gather codebook rows via a one-hot MXU matmul (exact code values).
        onehot = (col == idx).astype(gather_dtype)                # (TN, K)
        quant = lax.dot_general(
            onehot, cbg_ref[g], (((1,), (0,)), ((), ())),
            preferred_element_type=jnp.float32)                   # (TN, Dg)

        # Forward value of x + (quantized - x).detach() is exactly `quantized`.
        # Store per group: short live ranges, no concatenate.
        o_ref[:, lo:hi] = quant.astype(o_ref.dtype)


def vector_quantize(x, codebook, *, tn=None, use_bf16_matmul=True):
    """x: (B, S, D), codebook: (G, K, D//G) -> (B, S, D) quantized forward value."""
    B, S, D = x.shape
    G, K, Dg = codebook.shape
    if D != G * Dg:
        raise ValueError("codebook_dim must equal num_groups * group_dim")
    N = B * S
    out_dtype = x.dtype

    mm_dtype = jnp.bfloat16 if use_bf16_matmul else jnp.float32
    # One-hot gather is exact in bf16, so use bf16 when the output is bf16;
    # keep fp32 when the output is fp32 so emitted rows are bit-exact.
    gather_dtype = jnp.bfloat16 if out_dtype == jnp.bfloat16 else jnp.float32

    # Codebook prepared once in the wrapper (tiny XLA ops, hoisted off the grid).
    cb_mm = codebook.astype(mm_dtype)                    # (G, K, Dg)
    cb_t = jnp.swapaxes(cb_mm, 1, 2)                     # (G, Dg, K): K on lanes
    cb_g = codebook.astype(gather_dtype)                 # (G, K, Dg) gather operand
    half_cn = 0.5 * jnp.sum(cb_mm.astype(jnp.float32) ** 2, axis=-1)   # (G, K)

    # ---- generation-aware tile / VMEM sizing --------------------------------
    try:
        vmem_cap = int(pltpu.get_tpu_info().vmem_capacity_bytes)
    except Exception:
        vmem_cap = 128 * 1024 * 1024
    if tn is None:
        tn = 256 if vmem_cap <= (80 << 20) else 512      # v7x vs v5e/v6e default

    def _isz(dt):
        return jnp.dtype(dt).itemsize

    in_b, out_b = _isz(x.dtype), _isz(out_dtype)
    mm_b, g_b = _isz(mm_dtype), _isz(gather_dtype)
    # Budget conservatively for double-buffered resident inputs even though we
    # request single buffering below.
    resident = 2 * (G * Dg * K * mm_b + G * K * Dg * g_b + G * K * 4)
    per_tok = (2 * D * in_b + 2 * D * out_b   # double-buffered x / out tiles
               + D * mm_b                     # matmul-dtype cast of the tile
               + 5 * K * 4                    # (TN, K) score / iota / mask / one-hot
               + Dg * 4)                      # per-group fp32 result
    budget = int(vmem_cap * 0.85) - resident - (4 << 20)
    tn_budget = max(8, budget // max(per_tok, 1))

    n_pad8 = ((N + 7) // 8) * 8
    TN = int(min(tn, tn_budget))
    if n_pad8 > 8:
        # At least two grid steps so the "parallel" axis can split across
        # v7x's two TensorCores (and the pipeline actually overlaps).
        TN = min(TN, ((n_pad8 // 2 + 7) // 8) * 8)
    TN = max(8, (TN // 8) * 8)
    TN = min(TN, n_pad8)

    x2 = x.reshape(N, D)                                 # flatten only, no transpose
    n_pad = (-N) % TN
    if n_pad:
        x2 = jnp.pad(x2, ((0, n_pad), (0, 0)))
    n_tiles = (N + n_pad) // TN

    vmem_limit = int(max(32 << 20, min(int(vmem_cap * 0.875), 112 << 20)))

    kernel = functools.partial(
        _vq_kernel, num_groups=G, group_dim=Dg, codebook_size=K,
        mm_dtype=mm_dtype, gather_dtype=gather_dtype)

    def build(resident_mode):
        extra = {} if resident_mode is None else {"pipeline_mode": resident_mode}
        return pl.pallas_call(
            kernel,
            out_shape=jax.ShapeDtypeStruct((N + n_pad, D), out_dtype),
            grid_spec=pltpu.PrefetchScalarGridSpec(
                num_scalar_prefetch=0,
                grid=(n_tiles,),
                in_specs=[
                    pl.BlockSpec((TN, D), lambda i: (i, 0)),                 # token tile
                    pl.BlockSpec((G, Dg, K), lambda i: (0, 0, 0), **extra),  # cb^T (resident)
                    pl.BlockSpec((G, K, Dg), lambda i: (0, 0, 0), **extra),  # cb gather (resident)
                    pl.BlockSpec((G, K), lambda i: (0, 0), **extra),         # 0.5*||c||^2
                ],
                out_specs=pl.BlockSpec((TN, D), lambda i: (i, 0)),
            ),
            compiler_params=pltpu.CompilerParams(
                dimension_semantics=("parallel",),   # N-tile axis: megacore / 2-TC split
                vmem_limit_bytes=vmem_limit,
            ),
        )

    try:
        # Resident (constant index_map) inputs only need a single VMEM buffer.
        out = build(pl.Buffered(1))(x2, cb_t, cb_g, half_cn)
    except Exception:
        # Some jax versions reject single-buffered blocks; use default buffering.
        out = build(None)(x2, cb_t, cb_g, half_cn)

    if n_pad:
        out = out[:N]
    return out.reshape(B, S, D)


def _reference(x, codebook):
    """Pure-JAX fp32 replica of the PyTorch forward (full distance + argmin)."""
    B, S, D = x.shape
    G, K, Dg = codebook.shape
    xg = x.reshape(B, S, G, Dg)
    outs = []
    for g in range(G):
        x_g = xg[:, :, g, :]
        cb = codebook[g]
        x_norm = jnp.sum(x_g ** 2, axis=-1, keepdims=True)
        cb_norm = jnp.sum(cb ** 2, axis=-1)
        dist = (x_norm + cb_norm[None, None, :]
                - 2.0 * jnp.einsum("bsd,kd->bsk", x_g, cb,
                                   precision=lax.Precision.HIGHEST))
        idx = jnp.argmin(dist, axis=-1)
        outs.append(cb[idx])
    q = jnp.stack(outs, axis=2).reshape(B, S, D)
    return x + (q - x)   # same forward value as x + (q - x).detach()


def _check_bf16_path(x, codebook, out, tol=0.5):
    """Every emitted row must be an exact codebook row with (near-)optimal distance."""
    B, S, D = x.shape
    G, K, Dg = codebook.shape
    xg = jnp.reshape(x, (B * S, G, Dg))
    qg = jnp.reshape(out.astype(jnp.float32), (B * S, G, Dg))
    for g in range(G):
        row_err = jnp.min(
            jnp.max(jnp.abs(qg[:, g, None, :] - codebook[g][None, :, :]), axis=-1),
            axis=-1)
        if not bool(jnp.all(row_err <= 1e-5)):
            raise AssertionError("bf16 path emitted a non-codebook row")
        d_pick = jnp.sum((xg[:, g] - qg[:, g]) ** 2, axis=-1)
        d_all = jnp.sum((xg[:, g, None, :] - codebook[g][None, :, :]) ** 2, axis=-1)
        d_min = jnp.min(d_all, axis=-1)
        if not bool(jnp.all(d_pick <= d_min + tol)):
            raise AssertionError("bf16 path picked a clearly sub-optimal code")


if __name__ == "__main__":
    # Small shapes consistent with the module's forward: x is (B, S, D).
    B, S, D = 2, 8, 32
    G, K = 2, 16               # num_groups, codebook_size
    Dg = D // G

    key = jax.random.PRNGKey(0)
    kx, kc = jax.random.split(key)
    x = jax.random.normal(kx, (B, S, D), dtype=jnp.float32)
    # kaiming_uniform_-style per-group init: U(-sqrt(6/fan_in), +sqrt(6/fan_in)).
    bound = (6.0 / Dg) ** 0.5
    codebook = jax.random.uniform(kc, (G, K, Dg), dtype=jnp.float32,
                                  minval=-bound, maxval=bound)

    # 1) fp32 score path: directly comparable to the fp32 reference.
    out_fp32 = jax.block_until_ready(
        vector_quantize(x, codebook, use_bf16_matmul=False))
    ref = _reference(x, codebook)
    if not bool(jnp.allclose(out_fp32, ref, atol=1e-5, rtol=1e-5)):
        raise AssertionError("fp32 Pallas VQ output mismatch vs reference")

    # 2) default (bf16 score matmul) production path: every emitted row must be
    #    an exact codebook row whose distance is (near-)optimal; bf16 rounding
    #    may legally flip near-ties, so exact equality is not required.
    out_bf16 = jax.block_until_ready(vector_quantize(x, codebook))
    _check_bf16_path(x, codebook, out_bf16)

    print("KERNEL_OK")
</pallas_src>

<mosaic_0001>
module attributes {stable_mosaic.version = 11 : i64} {
  func.func @_vq_kernel(%arg0: i32, %arg1: memref<8x32xf32, #tpu.memory_space<vmem>>, %arg2: memref<2x16x16xf32, #tpu.memory_space<vmem>>, %arg3: memref<2x16x16xf32, #tpu.memory_space<vmem>>, %arg4: memref<2x16xf32, #tpu.memory_space<vmem>>, %arg5: memref<8x32xf32, #tpu.memory_space<vmem>>) attributes {dimension_semantics = [#tpu.dimension_semantics<parallel>], iteration_bounds = array<i64: 2>, scalar_prefetch = 0 : i64, scratch_operands = 0 : i64, tpu.core_type = #tpu.core_type<tc>, window_params = [{transform_indices = @transform_0, window_bounds = array<i64: 8, 32>}, {pipeline_mode = #tpu.pipeline_mode<synchronous>, transform_indices = @transform_1, window_bounds = array<i64: 2, 16, 16>}, {pipeline_mode = #tpu.pipeline_mode<synchronous>, transform_indices = @transform_2, window_bounds = array<i64: 2, 16, 16>}, {pipeline_mode = #tpu.pipeline_mode<synchronous>, transform_indices = @transform_3, window_bounds = array<i64: 2, 16>}, {transform_indices = @transform_4, window_bounds = array<i64: 8, 32>}]} {
    %c0 = arith.constant 0 : index
    %c0_0 = arith.constant 0 : index
    %0 = vector.load %arg1[%c0, %c0_0] : memref<8x32xf32, #tpu.memory_space<vmem>>, vector<8x32xf32>
    %c0_1 = arith.constant 0 : index
    %c0_2 = arith.constant 0 : index
    %1 = vector.load %arg4[%c0_1, %c0_2] : memref<2x16xf32, #tpu.memory_space<vmem>>, vector<2x16xf32>
    %2 = tpu.iota {dimensions = array<i32: 1>} : vector<8x16xi32>
    %3 = vector.extract_strided_slice %0 {offsets = [0, 0], sizes = [8, 16], strides = [1, 1]} : vector<8x32xf32> to vector<8x16xf32>
    %c0_3 = arith.constant 0 : index
    %c0_4 = arith.constant 0 : index
    %c0_5 = arith.constant 0 : index
    %4 = vector.load %arg2[%c0_3, %c0_4, %c0_5] : memref<2x16x16xf32, #tpu.memory_space<vmem>>, vector<1x16x16xf32>
    %5 = vector.shape_cast %4 : vector<1x16x16xf32> to vector<16x16xf32>
    %cst = arith.constant dense<0.000000e+00> : vector<8x16xf32>
    %6 = tpu.matmul %3, %5, %cst {dimension_numbers = #tpu.dot_dimension_numbers<[1], [0], [0], [1], [0, 0, 1, 1], [], []>} : vector<8x16xf32>, vector<16x16xf32>, vector<8x16xf32> -> vector<8x16xf32>
    %7 = vector.extract_strided_slice %1 {offsets = [0, 0], sizes = [1, 16], strides = [1, 1]} : vector<2x16xf32> to vector<1x16xf32>
    %8 = vector.broadcast %7 : vector<1x16xf32> to vector<8x16xf32>
    %9 = arith.subf %6, %8 : vector<8x16xf32>
    %cst_6 = arith.constant dense<0xFF800000> : vector<8xf32>
    %10 = vector.multi_reduction <maximumf>, %9, %cst_6 [1] : vector<8x16xf32> to vector<8xf32>
    %11 = vector.shape_cast %10 : vector<8xf32> to vector<8x1xf32>
    %12 = vector.broadcast %11 : vector<8x1xf32> to vector<8x16xf32>
    %13 = arith.cmpf oge, %9, %12 : vector<8x16xf32>
    %c16_i32 = arith.constant 16 : i32
    %14 = vector.broadcast %c16_i32 : i32 to vector<8x16xi32>
    %15 = arith.select %13, %2, %14 : vector<8x16xi1>, vector<8x16xi32>
    %cst_7 = arith.constant dense<2147483647> : vector<8xi32>
    %16 = vector.multi_reduction <minsi>, %15, %cst_7 [1] : vector<8x16xi32> to vector<8xi32>
    %17 = vector.shape_cast %16 : vector<8xi32> to vector<8x1xi32>
    %18 = vector.broadcast %17 : vector<8x1xi32> to vector<8x16xi32>
    %19 = arith.cmpi eq, %2, %18 : vector<8x16xi32>
    %20 = arith.extui %19 : vector<8x16xi1> to vector<8x16xi32>
    %21 = arith.sitofp %20 : vector<8x16xi32> to vector<8x16xf32>
    %c0_8 = arith.constant 0 : index
    %c0_9 = arith.constant 0 : index
    %c0_10 = arith.constant 0 : index
    %22 = vector.load %arg3[%c0_8, %c0_9, %c0_10] : memref<2x16x16xf32, #tpu.memory_space<vmem>>, vector<1x16x16xf32>
    %23 = vector.shape_cast %22 : vector<1x16x16xf32> to vector<16x16xf32>
    %cst_11 = arith.constant dense<0.000000e+00> : vector<8x16xf32>
    %24 = tpu.matmul %21, %23, %cst_11 {dimension_numbers = #tpu.dot_dimension_numbers<[1], [0], [0], [1], [0, 0, 1, 1], [], []>} : vector<8x16xf32>, vector<16x16xf32>, vector<8x16xf32> -> vector<8x16xf32>
    %c0_12 = arith.constant 0 : index
    %c0_13 = arith.constant 0 : index
    %25 = vector.load %arg5[%c0_12, %c0_13] : memref<8x32xf32, #tpu.memory_space<vmem>>, vector<8x16xf32>
    tpu.vector_store %arg5[%c0_12, %c0_13], %24 {strides = array<i32>} : memref<8x32xf32, #tpu.memory_space<vmem>>, vector<8x16xf32>,
    %26 = vector.extract_strided_slice %0 {offsets = [0, 16], sizes = [8, 16], strides = [1, 1]} : vector<8x32xf32> to vector<8x16xf32>
    %c1 = arith.constant 1 : index
    %c0_14 = arith.constant 0 : index
    %c0_15 = arith.constant 0 : index
    %27 = vector.load %arg2[%c1, %c0_14, %c0_15] : memref<2x16x16xf32, #tpu.memory_space<vmem>>, vector<1x16x16xf32>
    %28 = vector.shape_cast %27 : vector<1x16x16xf32> to vector<16x16xf32>
    %cst_16 = arith.constant dense<0.000000e+00> : vector<8x16xf32>
    %29 = tpu.matmul %26, %28, %cst_16 {dimension_numbers = #tpu.dot_dimension_numbers<[1], [0], [0], [1], [0, 0, 1, 1], [], []>} : vector<8x16xf32>, vector<16x16xf32>, vector<8x16xf32> -> vector<8x16xf32>
    %30 = vector.extract_strided_slice %1 {offsets = [1, 0], sizes = [1, 16], strides = [1, 1]} : vector<2x16xf32> to vector<1x16xf32>
    %31 = vector.broadcast %30 : vector<1x16xf32> to vector<8x16xf32>
    %32 = arith.subf %29, %31 : vector<8x16xf32>
    %cst_17 = arith.constant dense<0xFF800000> : vector<8xf32>
    %33 = vector.multi_reduction <maximumf>, %32, %cst_17 [1] : vector<8x16xf32> to vector<8xf32>
    %34 = vector.shape_cast %33 : vector<8xf32> to vector<8x1xf32>
    %35 = vector.broadcast %34 : vector<8x1xf32> to vector<8x16xf32>
    %36 = arith.cmpf oge, %32, %35 : vector<8x16xf32>
    %c16_i32_18 = arith.constant 16 : i32
    %37 = vector.broadcast %c16_i32_18 : i32 to vector<8x16xi32>
    %38 = arith.select %36, %2, %37 : vector<8x16xi1>, vector<8x16xi32>
    %cst_19 = arith.constant dense<2147483647> : vector<8xi32>
    %39 = vector.multi_reduction <minsi>, %38, %cst_19 [1] : vector<8x16xi32> to vector<8xi32>
    %40 = vector.shape_cast %39 : vector<8xi32> to vector<8x1xi32>
    %41 = vector.broadcast %40 : vector<8x1xi32> to vector<8x16xi32>
    %42 = arith.cmpi eq, %2, %41 : vector<8x16xi32>
    %43 = arith.extui %42 : vector<8x16xi1> to vector<8x16xi32>
    %44 = arith.sitofp %43 : vector<8x16xi32> to vector<8x16xf32>
    %c1_20 = arith.constant 1 : index
    %c0_21 = arith.constant 0 : index
    %c0_22 = arith.constant 0 : index
    %45 = vector.load %arg3[%c1_20, %c0_21, %c0_22] : memref<2x16x16xf32, #tpu.memory_space<vmem>>, vector<1x16x16xf32>
    %46 = vector.shape_cast %45 : vector<1x16x16xf32> to vector<16x16xf32>
    %cst_23 = arith.constant dense<0.000000e+00> : vector<8x16xf32>
    %47 = tpu.matmul %44, %46, %cst_23 {dimension_numbers = #tpu.dot_dimension_numbers<[1], [0], [0], [1], [0, 0, 1, 1], [], []>} : vector<8x16xf32>, vector<16x16xf32>, vector<8x16xf32> -> vector<8x16xf32>
    %c0_24 = arith.constant 0 : index
    %c16 = arith.constant 16 : index
    %48 = vector.load %arg5[%c0_24, %c16] : memref<8x32xf32, #tpu.memory_space<vmem>>, vector<8x16xf32>
    tpu.vector_store %arg5[%c0_24, %c16], %47 {strides = array<i32>} : memref<8x32xf32, #tpu.memory_space<vmem>>, vector<8x16xf32>,
    return
  }
  func.func @transform_0(%arg0: i32) -> (i32, i32) {
    %c0_i32 = arith.constant 0 : i32
    %c0_i32_0 = arith.constant 0 : i32
    return %arg0, %c0_i32 : i32, i32
  }
  func.func @transform_1(%arg0: i32) -> (i32, i32, i32) {
    %c0_i32 = arith.constant 0 : i32
    %c0_i32_0 = arith.constant 0 : i32
    %c0_i32_1 = arith.constant 0 : i32
    %c0_i32_2 = arith.constant 0 : i32
    return %c0_i32, %c0_i32_0, %c0_i32_1 : i32, i32, i32
  }
  func.func @transform_2(%arg0: i32) -> (i32, i32, i32) {
    %c0_i32 = arith.constant 0 : i32
    %c0_i32_0 = arith.constant 0 : i32
    %c0_i32_1 = arith.constant 0 : i32
    %c0_i32_2 = arith.constant 0 : i32
    return %c0_i32, %c0_i32_0, %c0_i32_1 : i32, i32, i32
  }
  func.func @transform_3(%arg0: i32) -> (i32, i32) {
    %c0_i32 = arith.constant 0 : i32
    %c0_i32_0 = arith.constant 0 : i32
    %c0_i32_1 = arith.constant 0 : i32
    return %c0_i32, %c0_i32_0 : i32, i32
  }
  func.func @transform_4(%arg0: i32) -> (i32, i32) {
    %c0_i32 = arith.constant 0 : i32
    %c0_i32_0 = arith.constant 0 : i32
    return %arg0, %c0_i32 : i32, i32
  }
}

module attributes {stable_mosaic.version = 11 : i64} {
  func.func @_vq_kernel(%arg0: i32, %arg1: memref<8x32xf32, #tpu.memory_space<vmem>>, %arg2: memref<2x16x16xf32, #tpu.memory_space<vmem>>, %arg3: memref<2x16x16xf32, #tpu.memory_space<vmem>>, %arg4: memref<2x16xf32, #tpu.memory_space<vmem>>, %arg5: memref<8x32xf32, #tpu.memory_space<vmem>>) attributes {dimension_semantics = [#tpu.dimension_semantics<parallel>], iteration_bounds = array<i64: 2>, scalar_prefetch = 0 : i64, scratch_operands = 0 : i64, tpu.core_type = #tpu.core_type<tc>, window_params = [{transform_indices = @transform_0, window_bounds = array<i64: 8, 32>}, {pipeline_mode = #tpu.pipeline_mode<synchronous>, transform_indices = @transform_1, window_bounds = array<i64: 2, 16, 16>}, {pipeline_mode = #tpu.pipeline_mode<synchronous>, transform_indices = @transform_2, window_bounds = array<i64: 2, 16, 16>}, {pipeline_mode = #tpu.pipeline_mode<synchronous>, transform_indices = @transform_3, window_bounds = array<i64: 2, 16>}, {transform_indices = @transform_4, window_bounds = array<i64: 8, 32>}]} {
    %c0 = arith.constant 0 : index
    %c0_0 = arith.constant 0 : index
    %0 = vector.load %arg1[%c0, %c0_0] : memref<8x32xf32, #tpu.memory_space<vmem>>, vector<8x32xf32>
    %c0_1 = arith.constant 0 : index
    %c0_2 = arith.constant 0 : index
    %1 = vector.load %arg4[%c0_1, %c0_2] : memref<2x16xf32, #tpu.memory_space<vmem>>, vector<2x16xf32>
    %2 = tpu.iota {dimensions = array<i32: 1>} : vector<8x16xi32>
    %3 = vector.extract_strided_slice %0 {offsets = [0, 0], sizes = [8, 16], strides = [1, 1]} : vector<8x32xf32> to vector<8x16xf32>
    %c0_3 = arith.constant 0 : index
    %c0_4 = arith.constant 0 : index
    %c0_5 = arith.constant 0 : index
    %4 = vector.load %arg2[%c0_3, %c0_4, %c0_5] : memref<2x16x16xf32, #tpu.memory_space<vmem>>, vector<1x16x16xf32>
    %5 = vector.shape_cast %4 : vector<1x16x16xf32> to vector<16x16xf32>
    %cst = arith.constant dense<0.000000e+00> : vector<8x16xf32>
    %6 = tpu.matmul %3, %5, %cst {dimension_numbers = #tpu.dot_dimension_numbers<[1], [0], [0], [1], [0, 0, 1, 1], [], []>} : vector<8x16xf32>, vector<16x16xf32>, vector<8x16xf32> -> vector<8x16xf32>
    %7 = vector.extract_strided_slice %1 {offsets = [0, 0], sizes = [1, 16], strides = [1, 1]} : vector<2x16xf32> to vector<1x16xf32>
    %8 = vector.broadcast %7 : vector<1x16xf32> to vector<8x16xf32>
    %9 = arith.subf %6, %8 : vector<8x16xf32>
    %cst_6 = arith.constant dense<0xFF800000> : vector<8xf32>
    %10 = vector.multi_reduction <maximumf>, %9, %cst_6 [1] : vector<8x16xf32> to vector<8xf32>
    %11 = vector.shape_cast %10 : vector<8xf32> to vector<8x1xf32>
    %12 = vector.broadcast %11 : vector<8x1xf32> to vector<8x16xf32>
    %13 = arith.cmpf oge, %9, %12 : vector<8x16xf32>
    %c16_i32 = arith.constant 16 : i32
    %14 = vector.broadcast %c16_i32 : i32 to vector<8x16xi32>
    %15 = arith.select %13, %2, %14 : vector<8x16xi1>, vector<8x16xi32>
    %cst_7 = arith.constant dense<2147483647> : vector<8xi32>
    %16 = vector.multi_reduction <minsi>, %15, %cst_7 [1] : vector<8x16xi32> to vector<8xi32>
    %17 = vector.shape_cast %16 : vector<8xi32> to vector<8x1xi32>
    %18 = vector.broadcast %17 : vector<8x1xi32> to vector<8x16xi32>
    %19 = arith.cmpi eq, %2, %18 : vector<8x16xi32>
    %20 = arith.extui %19 : vector<8x16xi1> to vector<8x16xi32>
    %21 = arith.sitofp %20 : vector<8x16xi32> to vector<8x16xf32>
    %c0_8 = arith.constant 0 : index
    %c0_9 = arith.constant 0 : index
    %c0_10 = arith.constant 0 : index
    %22 = vector.load %arg3[%c0_8, %c0_9, %c0_10] : memref<2x16x16xf32, #tpu.memory_space<vmem>>, vector<1x16x16xf32>
    %23 = vector.shape_cast %22 : vector<1x16x16xf32> to vector<16x16xf32>
    %cst_11 = arith.constant dense<0.000000e+00> : vector<8x16xf32>
    %24 = tpu.matmul %21, %23, %cst_11 {dimension_numbers = #tpu.dot_dimension_numbers<[1], [0], [0], [1], [0, 0, 1, 1], [], []>} : vector<8x16xf32>, vector<16x16xf32>, vector<8x16xf32> -> vector<8x16xf32>
    %c0_12 = arith.constant 0 : index
    %c0_13 = arith.constant 0 : index
    %25 = vector.load %arg5[%c0_12, %c0_13] : memref<8x32xf32, #tpu.memory_space<vmem>>, vector<8x16xf32>
    tpu.vector_store %arg5[%c0_12, %c0_13], %24 {strides = array<i32>} : memref<8x32xf32, #tpu.memory_space<vmem>>, vector<8x16xf32>,
    %26 = vector.extract_strided_slice %0 {offsets = [0, 16], sizes = [8, 16], strides = [1, 1]} : vector<8x32xf32> to vector<8x16xf32>
    %c1 = arith.constant 1 : index
    %c0_14 = arith.constant 0 : index
    %c0_15 = arith.constant 0 : index
    %27 = vector.load %arg2[%c1, %c0_14, %c0_15] : memref<2x16x16xf32, #tpu.memory_space<vmem>>, vector<1x16x16xf32>
    %28 = vector.shape_cast %27 : vector<1x16x16xf32> to vector<16x16xf32>
    %cst_16 = arith.constant dense<0.000000e+00> : vector<8x16xf32>
    %29 = tpu.matmul %26, %28, %cst_16 {dimension_numbers = #tpu.dot_dimension_numbers<[1], [0], [0], [1], [0, 0, 1, 1], [], []>} : vector<8x16xf32>, vector<16x16xf32>, vector<8x16xf32> -> vector<8x16xf32>
    %30 = vector.extract_strided_slice %1 {offsets = [1, 0], sizes = [1, 16], strides = [1, 1]} : vector<2x16xf32> to vector<1x16xf32>
    %31 = vector.broadcast %30 : vector<1x16xf32> to vector<8x16xf32>
    %32 = arith.subf %29, %31 : vector<8x16xf32>
    %cst_17 = arith.constant dense<0xFF800000> : vector<8xf32>
    %33 = vector.multi_reduction <maximumf>, %32, %cst_17 [1] : vector<8x16xf32> to vector<8xf32>
    %34 = vector.shape_cast %33 : vector<8xf32> to vector<8x1xf32>
    %35 = vector.broadcast %34 : vector<8x1xf32> to vector<8x16xf32>
    %36 = arith.cmpf oge, %32, %35 : vector<8x16xf32>
    %c16_i32_18 = arith.constant 16 : i32
    %37 = vector.broadcast %c16_i32_18 : i32 to vector<8x16xi32>
    %38 = arith.select %36, %2, %37 : vector<8x16xi1>, vector<8x16xi32>
    %cst_19 = arith.constant dense<2147483647> : vector<8xi32>
    %39 = vector.multi_reduction <minsi>, %38, %cst_19 [1] : vector<8x16xi32> to vector<8xi32>
    %40 = vector.shape_cast %39 : vector<8xi32> to vector<8x1xi32>
    %41 = vector.broadcast %40 : vector<8x1xi32> to vector<8x16xi32>
    %42 = arith.cmpi eq, %2, %41 : vector<8x16xi32>
    %43 = arith.extui %42 : vector<8x16xi1> to vector<8x16xi32>
    %44 = arith.sitofp %43 : vector<8x16xi32> to vector<8x16xf32>
    %c1_20 = arith.constant 1 : index
    %c0_21 = arith.constant 0 : index
    %c0_22 = arith.constant 0 : index
    %45 = vector.load %arg3[%c1_20, %c0_21, %c0_22] : memref<2x16x16xf32, #tpu.memory_space<vmem>>, vector<1x16x16xf32>
    %46 = vector.shape_cast %45 : vector<1x16x16xf32> to vector<16x16xf32>
    %cst_23 = arith.constant dense<0.000000e+00> : vector<8x16xf32>
    %47 = tpu.matmul %44, %46, %cst_23 {dimension_numbers = #tpu.dot_dimension_numbers<[1], [0], [0], [1], [0, 0, 1, 1], [], []>} : vector<8x16xf32>, vector<16x16xf32>, vector<8x16xf32> -> vector<8x16xf32>
    %c0_24 = arith.constant 0 : index
    %c16 = arith.constant 16 : index
    %48 = vector.load %arg5[%c0_24, %c16] : memref<8x32xf32, #tpu.memory_space<vmem>>, vector<8x16xf32>
    tpu.vector_store %arg5[%c0_24, %c16], %47 {strides = array<i32>} : memref<8x32xf32, #tpu.memory_space<vmem>>, vector<8x16xf32>,
    return
  }
  func.func @transform_0(%arg0: i32) -> (i32, i32) {
    %c0_i32 = arith.constant 0 : i32
    %c0_i32_0 = arith.constant 0 : i32
    return %arg0, %c0_i32 : i32, i32
  }
  func.func @transform_1(%arg0: i32) -> (i32, i32, i32) {
    %c0_i32 = arith.constant 0 : i32
    %c0_i32_0 = arith.constant 0 : i32
    %c0_i32_1 = arith.constant 0 : i32
    %c0_i32_2 = arith.constant 0 : i32
    return %c0_i32, %c0_i32_0, %c0_i32_1 : i32, i32, i32
  }
  func.func @transform_2(%arg0: i32) -> (i32, i32, i32) {
    %c0_i32 = arith.constant 0 : i32
    %c0_i32_0 = arith.constant 0 : i32
    %c0_i32_1 = arith.constant 0 : i32
    %c0_i32_2 = arith.constant 0 : i32
    return %c0_i32, %c0_i32_0, %c0_i32_1 : i32, i32, i32
  }
  func.func @transform_3(%arg0: i32) -> (i32, i32) {
    %c0_i32 = arith.constant 0 : i32
    %c0_i32_0 = arith.constant 0 : i32
    %c0_i32_1 = arith.constant 0 : i32
    return %c0_i32, %c0_i32_0 : i32, i32
  }
  func.func @transform_4(%arg0: i32) -> (i32, i32) {
    %c0_i32 = arith.constant 0 : i32
    %c0_i32_0 = arith.constant 0 : i32
    return %arg0, %c0_i32 : i32, i32
  }
}

</mosaic_0001>

<bundles_post_ra>
// kernel: tpu_custom_call.1
= control target key start
LH: loop header
LB: loop body
LE: loop exit
PB: predicated region body
PF: predicated region fallthrough
CT: control target
= control target key end

     0   :  { %9 = vsyncpa [#allocation3], 0  ;;  %s967_s0 = inlined_call_operand.hbm [shape: f32[16,32], index: 0, kind: input, shape index: {}]   ;;  %s968_s1 = inlined_call_operand.hbm [shape: f32[2,16,16], index: 1, kind: input, shape index: {}]   ;;  %s969_s2 = inlined_call_operand.hbm [shape: f32[2,16,16], index: 2, kind: input, shape index: {}]   ;;  %s970_s3 = inlined_call_operand.vmem [shape: f32[2,16], index: 3, kind: input, shape index: {}]   ;;  %s971_s4 = inlined_call_operand.hbm [shape: f32[16,32], index: 4, kind: output, shape index: {}]  }
   0x1   :  { %11 = vsyncpa [#allocation3 + $0x1], 0 }
   0x2   :  { %12 = vsyncpa [#allocation6], 0 }
   0x3   :  { %13 = vsyncpa [#allocation4], 0 }
   0x4   :  { %15 = vsyncpa [#allocation4 + $0x1], 0  ;;  %s806_s15 = smov 0   ;;  %s808_s16 = smov 0  }
   0x5   :  { %s810_s17 = smov 0   ;;  %s812_s18 = smov 0  }
   0x6 LB: > { %s152_s21 = sshll.u32 %s968_s1, 4  ;;  %s830_s22 = sadd.s32 4294967295, %s772_s18   ;;  %s772_s18 = sphi %s812_s18, %s982_s18   ;;  %s768_s17 = sphi %s810_s17, %s981_s17   ;;  %s764_s16 = sphi %s808_s16, %s980_s16   ;;  %s760_s15 = sphi %s806_s15, %s979_s15   ;;  %s153_s21 = int_to_ptr.hbm [resolvable:$true] %s152_s21 }
   0x7   : > { %p519_p0 = scmp.ge.s32.totalorder %s772_s18, 1  ;;  %p42_p1 = scmp.eq.s32.totalorder %s830_s22, 0 }
   0x8   : > { %p141_p2 = scmp.lt.s32.totalorder %s772_s18, 3  ;;  %s774_s24 = smov [#allocation5]  }
   0x9   : > { %s154_s25 = sshll.u32 %s774_s24, 4  ;;  %s166_s28 = sshll.u32 %s969_s2, 4  ;;  %s155_s25 = int_to_ptr.vmem [resolvable:$true] %s154_s25  ;;  %s167_s28 = int_to_ptr.hbm [resolvable:$true] %s166_s28 }
   0xa   : > { %p835_p3 = pnand %p519_p0, %p141_p2  ;;  %s775_s29 = smov [#allocation7]  }
   0xb   : > { %s168_s30 = sshll.u32 %s775_s29, 4  ;;  %s776_s5 = smov 128   ;;  %s169_s30 = int_to_ptr.vmem [resolvable:$true] %s168_s30 }
   0xc   : > { %p552_p4 = pneg %p835_p3  ;;  %s777_s6 = smov 8  }
   0xd   : > { %s518_s7 = sadd.s32 4294967294, %s772_s18   ;;  %s849_s8 = sadd.s32 1, %s772_s18  }
   0xe   : > { %p553_p6 = pnand %p552_p4, %p42_p1  ;;  %s25_s9 = ssub.s32 %s772_s18, %s849_s8 }
   0xf   : > { %s28_s10 = sadd.s32 1, %s768_s17  ;;  %p26_p7 = scmp.eq.s32.totalorder %s25_s9, 0 }
  0x10   : > { %555 = dma.hbm_to_vmem [thread:$0]  (!%p553_p6), %s153_s21, 512, %s155_s25, [#allocation6], %s776_s5, %s776_s5, %s777_s6  }
  0x11   : > { %558 = dma.hbm_to_vmem [thread:$0]  (!%p553_p6), %s167_s28, 512, %s169_s30, [#allocation6], %s776_s5, %s776_s5, %s777_s6  }
  0x12   : > { %p35_p8 = scmp.ne.s32.totalorder %s768_s17, %s764_s16  ;;  %p36_p9 = scmp.eq.s32.totalorder %s772_s18, 0 }
  0x13   : > { %p41_p10 = scmp.ne.s32.totalorder %s764_s16, %s760_s15  ;;  %p128_p13 = scmp.eq.s32.totalorder %s830_s22, 1 }
  0x14   : > { %s860_s11 = scalar_select %p26_p7, %s768_s17, %s28_s10  }
  0x15   : > { %p862_p11 = por %p36_p9, %p35_p8  ;;  %p868_p12 = por %p42_p1, %p41_p10 }
  0x16   : > { %p134_p0 = scmp.eq.s32.totalorder %s518_s7, 1  ;;  %p569_p2 = scmp.lt.s32.totalorder %s772_s18, 2 }
  0x17   : > { %s185_s14 = sand.u32 1, %s768_s17   ;;  %p875_p4 = por %p128_p13, %p35_p8 }
  0x18   : > { %p879_p6 = por %p134_p0, %p41_p10  ;;  %s523_s21 = sshll.u32 %s185_s14, 3 }
  0x19   : > { %s524_s24 = sshll.u32 %s772_s18, 3  ;;  %s189_s28 = scalar_lea.vmem [#allocation2], %s523_s21 }
  0x1a   : > { %s193_s27 = scalar_lea.hbm %s967_s0, %s524_s24  ;;  %s197_s29 = sshll.u32 %s189_s28, 4  ;;  %s198_s29 = int_to_ptr.vmem [resolvable:$true] %s197_s29 }
  0x1b   : > { %s195_s30 = sshll.u32 %s193_s27, 4  ;;  %p889_p7 = pnand %p569_p2, %p862_p11  ;;  %s196_s30 = int_to_ptr.hbm [resolvable:$true] %s195_s30 }
  0x1c   : > { %s186_s6 = scalar_lea.sflag [#allocation3], %s185_s14  ;;  %s672_s7 = sshra.s32 %s196_s30, 4  ;;  %s673_s7 = int_to_ptr.hbm [resolvable:$true] %s672_s7 }
  0x1d   : > { %s674_s9 = scalar_lea.hbm %s673_s7, 8  ;;  %p676_p9 = pneg %p889_p7 }
  0x1e   : > { %p675_p8 = scmp.ne.s32.totalorder %s673_s7, %s674_s9  ;;  %s679_s24 = scalar_lea.hbm %s967_s0, 16 }
  0x1f   : > { %p680_p11 = scmp.lt.s32.totalorder %s673_s7, %s967_s0  ;;  %p681_p0 = scmp.lt.s32.totalorder %s679_s24, %s674_s9 }
  0x20   : > { %p677_p10 = pnand %p676_p9, %p675_p8 }
  0x21   : > { %p682_p2 = por %p681_p0, %p680_p11 }
  0x22   : > { %p678_p13 = pneg %p677_p10 }
  0x24   : > { %p683_p5 = pnand %p682_p2, %p678_p13 }
  0x26   : > { %686 = shalt.err (!%p683_p5)
}
  0x27   : > { %562 = dma.hbm_to_vmem [thread:$0]  (!%p889_p7), %s196_s30, 128, %s198_s29, %s186_s6  }
  0x28   : > { %206 = sbr.rel (%p835_p3) target bundleno = 918 (0x396), region = 36  ;;  %s906_s14 = sand.u32 (!%p835_p3), 1, %s764_s16  }
  0x29   : > { %s526_s26 = sshll.u32 (!%p835_p3), %s906_s14, 3  ;;  %s209_s27 = scalar_lea.sflag (!%p835_p3), [#allocation3], %s906_s14 }
  0x2a   : > { %s212_s28 = scalar_lea.vmem (!%p835_p3), [#allocation2], %s526_s26 }
  0x2d   : > { %747 = dma.done.wait (%p868_p12), %s209_s27, 128  }
  0x2e   : > { %749 = vsyncadd (%p868_p12), %s209_s27, 4294967168 }
  0x2f   : > { %751 = dma.done.wait (%p42_p1), [#allocation6], 1024  }
  0x30   : > { %753 = vsyncadd (%p42_p1), [#allocation6], 4294966272  ;;  %v248_v0 = vld [vmem:[%s212_s28] sm:$0xff]  ;;  %s778_s23 = smov 112   ;;  %v253_v3 = vld [vmem:[#allocation5 + $0x8] sm:$0xff]  ;;  %vm254_vm0 = vcmask 130048   ;;  %v250_v15 = vlaneseq }
  0x31   : > { %v331_v1 = vld [vmem:[#allocation5 + $0x18] sm:$0xff]  ;;  %v330_v2 = vld [vmem:[#allocation5 + $0x10] sm:$0xff]  ;;  %332 = vrot.lane.b32.xlu0 %v248_v0, %s778_s23  ;;  %v252_v4 = vld [vmem:[#allocation5] sm:$0xff]  ;;  %272 = vmatpush.msra.mxu0 %v253_v3  ;;  %v779_v39 = vmov 0.0   ;;  %s780_s30 = smov 16   ;;  %s537_s5 = sshll.u32 %s830_s22, 3 }
  0x32   : > { %350 = vmatpush.msra.mxu2 %v331_v1  ;;  %v249_v6 = vld [vmem:[%s970_s3] sm:$0x3]  ;;  %v251_v16 = vand.u32 127, %v250_v15  ;;  %v383_v31 = vld [vmem:[#allocation7 + $0x18] sm:$0xff]  ;;  %v304_v44 = vld [vmem:[#allocation7 + $0x8] sm:$0xff]  ;;  %s424_s9 = scalar_lea.hbm %s971_s4, %s537_s5  ;;  %s247_s10 = scalar_lea.vmem [#allocation8], %s526_s26 }
  0x33   : > { %273 = vmatpush.msra.mxu0 %v252_v4  ;;  %v278_v7 = vperm.slane %v249_v6, 0  ;;  %v356_v11 = vperm.slane %v249_v6, 1  ;;  %v382_v32 = vld [vmem:[#allocation7 + $0x10] sm:$0xff]  ;;  %401 = vmatpush.msra.mxu3 %v383_v31  ;;  %v303_v45 = vld [vmem:[#allocation7] sm:$0xff]  ;;  %s426_s21 = sshll.u32 %s247_s10, 4  ;;  %s428_s24 = sshll.u32 %s424_s9, 4  ;;  %s427_s21 = int_to_ptr.vmem [resolvable:$true] %s426_s21  ;;  %s429_s24 = int_to_ptr.hbm [resolvable:$true] %s428_s24 }
  0x34   : > { %351 = vmatpush.msra.mxu2 %v330_v2  ;;  %530 = vmatmul.msk.f32.vlgmr.msra.gmra.mxu0 %vm254_vm0, %v248_v0  ;;  %vm411_vm7 = vcmask 261248   ;;  %s414_s25 = scalar_lea.sflag [#allocation4], %s906_s14  ;;  %s716_s12 = sshra.s32 %s429_s24, 4  ;;  %s717_s12 = int_to_ptr.hbm [resolvable:$true] %s716_s12 }
  0x35   : > { %402 = vmatpush.msra.mxu3 %v382_v32  ;;  %322 = vmatpush.msra.mxu1 %v304_v44  ;;  %s718_s22 = scalar_lea.hbm %s717_s12, 8  ;;  %s722_s28 = scalar_lea.hbm %s971_s4, 16 }
  0x36   : > { %p719_p1 = scmp.ne.s32.totalorder %s717_s12, %s718_s22  ;;  %p723_p12 = scmp.lt.s32.totalorder %s717_s12, %s971_s4 }
  0x37   : > { %323 = vmatpush.msra.mxu1 %v303_v45  ;;  %p724_p7 = scmp.lt.s32.totalorder %s722_s28, %s718_s22 }
  0x38   : > { %p720_p3 = pnand %p719_p1, %p875_p4 }
  0x39   : > { %p725_p8 = por %p724_p7, %p723_p12 }
  0x3a   : > { %p721_p5 = pneg %p720_p3 }
  0x3c   : > { %p726_p9 = pnand %p725_p8, %p721_p5 }
  0xa3   : > { %v333_v5 = vpop.permute.xlu0 %332 }
  0xa4   : > { %533 = vmatmul.msk.f32.vlgmr.msra.gmra.mxu2 %vm254_vm0, %v333_v5 }
  0xb1   : > { %v275_v8 = vpop.f32.mrf.mxu0 }
  0xb2   : > { %v279_v9 = vsub.f32 %v275_v8, %v278_v7 }
  0xb4   : > { %v280_v10 = vsel %vm254_vm0, %v279_v9, -inf }
  0xb5   : > { %281 = vmax.xlane.f32.xlu1 %v280_v10 }
 0x127   : > { %v353_v12 = vpop.f32.mrf.mxu2 }
 0x128   : > { %v357_v13 = vsub.f32 %v353_v12, %v356_v11  ;;  %v282_v22 = vpop.xlane.xlu1 %281 }
 0x129   : > { %vm283_vm2 = vcmp.ge.f32.partialorder %v279_v9, %v282_v22 }
 0x12a   : > { %v358_v14 = vsel %vm254_vm0, %v357_v13, -inf  ;;  %v284_v24 = vsel %vm283_vm2, %v251_v16, 16 }
 0x12b   : > { %359 = vmax.xlane.f32.xlu0 %v358_v14  ;;  %v285_v27 = vsel %vm254_vm0, %v284_v24, 2147483647 }
 0x12c   : > { %v287_v29 = vshra.s32 %v285_v27, 16  ;;  %v286_v38 = vand.u32 65535, %v285_v27 }
 0x12e   : > { %v289_v30 = vcvt.s32.f32 %v287_v29  ;;  %v288_v42 = vcvt.s32.f32 %v286_v38 }
 0x19e   : > { %v360_v17 = vpop.xlane.xlu0 %359 }
 0x19f   : > { %vm361_vm1 = vcmp.ge.f32.partialorder %v357_v13, %v360_v17 }
 0x1a0   : > { %v362_v18 = vsel %vm361_vm1, %v251_v16, 16 }
 0x1a1   : > { %v363_v19 = vsel %vm254_vm0, %v362_v18, 2147483647 }
 0x1a2   : > { %v365_v20 = vshra.s32 %v363_v19, 16  ;;  %v364_v23 = vand.u32 65535, %v363_v19 }
 0x1a4   : > { %v367_v21 = vcvt.s32.f32 %v365_v20  ;;  %v366_v26 = vcvt.s32.f32 %v364_v23 }
 0x1a6   : > { %368 = vmin.xlane.f32.xlu1 %v367_v21 }
 0x219   : > { %v369_v25 = vpop.xlane.xlu1 %368 }
 0x21a   : > { %vm370_vm3 = vcmp.eq.f32.partialorder %v367_v21, %v369_v25  ;;  %v375_v33 = vcvt.f32.s32 %v369_v25 }
 0x21b   : > { %v371_v28 = vsel %vm370_vm3, %v366_v26, inf }
 0x21c   : > { %372 = vmin.xlane.f32.xlu2 %v371_v28  ;;  %v376_v35 = vshll.u32 %v375_v33, 16 }
 0x224   : > { %290 = vmin.xlane.f32.xlu2 %v289_v30 }
 0x28f   : > { %v373_v34 = vpop.xlane.xlu2 %372 }
 0x290   : > { %v374_v36 = vcvt.f32.s32 %v373_v34 }
 0x292   : > { %v377_v37 = vadd.s32 %v376_v35, %v374_v36 }
 0x294   : > { %vm378_vm4 = vcmp.eq.s32.totalorder %v251_v16, %v377_v37 }
 0x295   : > { %v534_v40 = vsel %vm378_vm4, 1.0, %v779_v39 }
 0x296   : > { %535 = vmatmul.msk.f32.vlgmr.msra.gmra.mxu3 %vm254_vm0, %v534_v40 }
 0x297   : > { %v291_v41 = vpop.xlane.xlu2 %290 }
 0x298   : > { %vm292_vm5 = vcmp.eq.f32.partialorder %v289_v30, %v291_v41  ;;  %v297_v46 = vcvt.f32.s32 %v291_v41 }
 0x299   : > { %v293_v43 = vsel %vm292_vm5, %v288_v42, inf }
 0x29a   : > { %294 = vmin.xlane.f32.xlu1 %v293_v43  ;;  %v298_v48 = vshll.u32 %v297_v46, 16 }
 0x30d   : > { %v295_v47 = vpop.xlane.xlu1 %294 }
 0x30e   : > { %v296_v49 = vcvt.f32.s32 %v295_v47 }
 0x310   : > { %v299_v50 = vadd.s32 %v298_v48, %v296_v49 }
 0x312   : > { %vm300_vm6 = vcmp.eq.s32.totalorder %v251_v16, %v299_v50 }
 0x313   : > { %v531_v51 = vsel %vm300_vm6, 1.0, %v779_v39 }
 0x314   : > { %532 = vmatmul.msk.f32.vlgmr.msra.gmra.mxu1 %vm254_vm0, %v531_v51 }
 0x319   : > { %v404_v52 = vpop.f32.mrf.mxu3 }
 0x31a   : > { %408 = vrot.lane.b32.xlu2 %v404_v52, %s780_s30 }
 0x374   : > { %v409_v54 = vpop.permute.xlu2 %408 }
 0x391   : > { %v325_v53 = vpop.f32.mrf.mxu1 }
 0x392   : > { %328 = vst.msk [vmem:[%s247_s10] sm:$0xff] %vm254_vm0, %v325_v53 }
 0x393   : > { %412 = vst.msk [vmem:[%s247_s10] sm:$0xff] %vm411_vm7, %v409_v54 }
 0x394   : > { %729 = shalt.err (!%p726_p9)
}
 0x395   : > { %550 = dma.vmem_to_hbm [thread:$0]  (%p875_p4), %s427_s21, 128, %s429_s24, %s414_s25  }
 0x396 PF: > { %s440_s14 = sand.u32 1, %s760_s15   ;;  %p978_p10 = scmp.ge.s32.totalorder %s772_s18, 2 }
 0x397   : > { %s441_s29 = scalar_lea.sflag [#allocation4], %s440_s14 }
 0x398   : > { %p564_p13 = pnand %p978_p10, %p879_p6 }
 0x39a   : > { %p565_p11 = pneg %p564_p13 }
 0x39c   : > { %755 = dma.done.wait (%p565_p11), %s441_s29, 128  }
 0x39d   : > { %757 = vsyncadd (%p565_p11), %s441_s29, 4294967168  ;;  %p18_p0 = scmp.ge.s32.totalorder %s849_s8, 4   ;;  %s979_s15 = smov %s764_s16 }
 0x39e   : > { %s980_s16 = smov %s768_s17  ;;  %s981_s17 = smov %s860_s11 }
 0x39f   : > { %s982_s18 = smov %s849_s8  ;;  %20 = sbr.rel (!%p18_p0) target bundleno = 6 (0x6), region = 91 }
 0x3a4   :  { %447 = vsyncpa [#allocation3], 1 }
 0x3a5   :  { %449 = vsyncpa [#allocation3 + $0x1], 1 }
 0x3a6   :  { %450 = vsyncpa [#allocation6], 1 }
 0x3a7   :  { %451 = vsyncpa [#allocation4], 1 }
 0x3a8   :  { %453 = vsyncpa [#allocation4 + $0x1], 1 }

// kernel: tpu_custom_call.1
= control target key start
LH: loop header
LB: loop body
LE: loop exit
PB: predicated region body
PF: predicated region fallthrough
CT: control target
= control target key end

     0   :  { %9 = vsyncpa [#allocation3], 0  ;;  %s967_s0 = inlined_call_operand.hbm [shape: f32[16,32], index: 0, kind: input, shape index: {}]   ;;  %s968_s1 = inlined_call_operand.hbm [shape: f32[2,16,16], index: 1, kind: input, shape index: {}]   ;;  %s969_s2 = inlined_call_operand.hbm [shape: f32[2,16,16], index: 2, kind: input, shape index: {}]   ;;  %s970_s3 = inlined_call_operand.vmem [shape: f32[2,16], index: 3, kind: input, shape index: {}]   ;;  %s971_s4 = inlined_call_operand.hbm [shape: f32[16,32], index: 4, kind: output, shape index: {}]  }
   0x1   :  { %11 = vsyncpa [#allocation3 + $0x1], 0 }
   0x2   :  { %12 = vsyncpa [#allocation6], 0 }
   0x3   :  { %13 = vsyncpa [#allocation4], 0 }
   0x4   :  { %15 = vsyncpa [#allocation4 + $0x1], 0  ;;  %s806_s15 = smov 0   ;;  %s808_s16 = smov 0  }
   0x5   :  { %s810_s17 = smov 0   ;;  %s812_s18 = smov 0  }
   0x6 LB: > { %s152_s21 = sshll.u32 %s968_s1, 4  ;;  %s830_s22 = sadd.s32 4294967295, %s772_s18   ;;  %s772_s18 = sphi %s812_s18, %s982_s18   ;;  %s768_s17 = sphi %s810_s17, %s981_s17   ;;  %s764_s16 = sphi %s808_s16, %s980_s16   ;;  %s760_s15 = sphi %s806_s15, %s979_s15   ;;  %s153_s21 = int_to_ptr.hbm [resolvable:$true] %s152_s21 }
   0x7   : > { %p519_p0 = scmp.ge.s32.totalorder %s772_s18, 1  ;;  %p42_p1 = scmp.eq.s32.totalorder %s830_s22, 0 }
   0x8   : > { %p141_p2 = scmp.lt.s32.totalorder %s772_s18, 3  ;;  %s774_s24 = smov [#allocation5]  }
   0x9   : > { %s154_s25 = sshll.u32 %s774_s24, 4  ;;  %s166_s28 = sshll.u32 %s969_s2, 4  ;;  %s155_s25 = int_to_ptr.vmem [resolvable:$true] %s154_s25  ;;  %s167_s28 = int_to_ptr.hbm [resolvable:$true] %s166_s28 }
   0xa   : > { %p835_p3 = pnand %p519_p0, %p141_p2  ;;  %s775_s29 = smov [#allocation7]  }
   0xb   : > { %s168_s30 = sshll.u32 %s775_s29, 4  ;;  %s776_s5 = smov 128   ;;  %s169_s30 = int_to_ptr.vmem [resolvable:$true] %s168_s30 }
   0xc   : > { %p552_p4 = pneg %p835_p3  ;;  %s777_s6 = smov 8  }
   0xd   : > { %s518_s7 = sadd.s32 4294967294, %s772_s18   ;;  %s849_s8 = sadd.s32 1, %s772_s18  }
   0xe   : > { %p553_p6 = pnand %p552_p4, %p42_p1  ;;  %s25_s9 = ssub.s32 %s772_s18, %s849_s8 }
   0xf   : > { %s28_s10 = sadd.s32 1, %s768_s17  ;;  %p26_p7 = scmp.eq.s32.totalorder %s25_s9, 0 }
  0x10   : > { %555 = dma.hbm_to_vmem [thread:$0]  (!%p553_p6), %s153_s21, 512, %s155_s25, [#allocation6], %s776_s5, %s776_s5, %s777_s6  }
  0x11   : > { %558 = dma.hbm_to_vmem [thread:$0]  (!%p553_p6), %s167_s28, 512, %s169_s30, [#allocation6], %s776_s5, %s776_s5, %s777_s6  }
  0x12   : > { %p35_p8 = scmp.ne.s32.totalorder %s768_s17, %s764_s16  ;;  %p36_p9 = scmp.eq.s32.totalorder %s772_s18, 0 }
  0x13   : > { %p41_p10 = scmp.ne.s32.totalorder %s764_s16, %s760_s15  ;;  %p128_p13 = scmp.eq.s32.totalorder %s830_s22, 1 }
  0x14   : > { %s860_s11 = scalar_select %p26_p7, %s768_s17, %s28_s10  }
  0x15   : > { %p862_p11 = por %p36_p9, %p35_p8  ;;  %p868_p12 = por %p42_p1, %p41_p10 }
  0x16   : > { %p134_p0 = scmp.eq.s32.totalorder %s518_s7, 1  ;;  %p569_p2 = scmp.lt.s32.totalorder %s772_s18, 2 }
  0x17   : > { %s185_s14 = sand.u32 1, %s768_s17   ;;  %p875_p4 = por %p128_p13, %p35_p8 }
  0x18   : > { %p879_p6 = por %p134_p0, %p41_p10  ;;  %s523_s21 = sshll.u32 %s185_s14, 3 }
  0x19   : > { %s524_s24 = sshll.u32 %s772_s18, 3  ;;  %s189_s28 = scalar_lea.vmem [#allocation2], %s523_s21 }
  0x1a   : > { %s193_s27 = scalar_lea.hbm %s967_s0, %s524_s24  ;;  %s197_s29 = sshll.u32 %s189_s28, 4  ;;  %s198_s29 = int_to_ptr.vmem [resolvable:$true] %s197_s29 }
  0x1b   : > { %s195_s30 = sshll.u32 %s193_s27, 4  ;;  %p889_p7 = pnand %p569_p2, %p862_p11  ;;  %s196_s30 = int_to_ptr.hbm [resolvable:$true] %s195_s30 }
  0x1c   : > { %s186_s6 = scalar_lea.sflag [#allocation3], %s185_s14  ;;  %s672_s7 = sshra.s32 %s196_s30, 4  ;;  %s673_s7 = int_to_ptr.hbm [resolvable:$true] %s672_s7 }
  0x1d   : > { %s674_s9 = scalar_lea.hbm %s673_s7, 8  ;;  %p676_p9 = pneg %p889_p7 }
  0x1e   : > { %p675_p8 = scmp.ne.s32.totalorder %s673_s7, %s674_s9  ;;  %s679_s24 = scalar_lea.hbm %s967_s0, 16 }
  0x1f   : > { %p680_p11 = scmp.lt.s32.totalorder %s673_s7, %s967_s0  ;;  %p681_p0 = scmp.lt.s32.totalorder %s679_s24, %s674_s9 }
  0x20   : > { %p677_p10 = pnand %p676_p9, %p675_p8 }
  0x21   : > { %p682_p2 = por %p681_p0, %p680_p11 }
  0x22   : > { %p678_p13 = pneg %p677_p10 }
  0x24   : > { %p683_p5 = pnand %p682_p2, %p678_p13 }
  0x26   : > { %686 = shalt.err (!%p683_p5)
}
  0x27   : > { %562 = dma.hbm_to_vmem [thread:$0]  (!%p889_p7), %s196_s30, 128, %s198_s29, %s186_s6  }
  0x28   : > { %206 = sbr.rel (%p835_p3) target bundleno = 918 (0x396), region = 36  ;;  %s906_s14 = sand.u32 (!%p835_p3), 1, %s764_s16  }
  0x29   : > { %s526_s26 = sshll.u32 (!%p835_p3), %s906_s14, 3  ;;  %s209_s27 = scalar_lea.sflag (!%p835_p3), [#allocation3], %s906_s14 }
  0x2a   : > { %s212_s28 = scalar_lea.vmem (!%p835_p3), [#allocation2], %s526_s26 }
  0x2d   : > { %747 = dma.done.wait (%p868_p12), %s209_s27, 128  }
  0x2e   : > { %749 = vsyncadd (%p868_p12), %s209_s27, 4294967168 }
  0x2f   : > { %751 = dma.done.wait (%p42_p1), [#allocation6], 1024  }
  0x30   : > { %753 = vsyncadd (%p42_p1), [#allocation6], 4294966272  ;;  %v248_v0 = vld [vmem:[%s212_s28] sm:$0xff]  ;;  %s778_s23 = smov 112   ;;  %v253_v3 = vld [vmem:[#allocation5 + $0x8] sm:$0xff]  ;;  %vm254_vm0 = vcmask 130048   ;;  %v250_v15 = vlaneseq }
  0x31   : > { %v331_v1 = vld [vmem:[#allocation5 + $0x18] sm:$0xff]  ;;  %v330_v2 = vld [vmem:[#allocation5 + $0x10] sm:$0xff]  ;;  %332 = vrot.lane.b32.xlu0 %v248_v0, %s778_s23  ;;  %v252_v4 = vld [vmem:[#allocation5] sm:$0xff]  ;;  %272 = vmatpush.msra.mxu0 %v253_v3  ;;  %v779_v39 = vmov 0.0   ;;  %s780_s30 = smov 16   ;;  %s537_s5 = sshll.u32 %s830_s22, 3 }
  0x32   : > { %350 = vmatpush.msra.mxu2 %v331_v1  ;;  %v249_v6 = vld [vmem:[%s970_s3] sm:$0x3]  ;;  %v251_v16 = vand.u32 127, %v250_v15  ;;  %v383_v31 = vld [vmem:[#allocation7 + $0x18] sm:$0xff]  ;;  %v304_v44 = vld [vmem:[#allocation7 + $0x8] sm:$0xff]  ;;  %s424_s9 = scalar_lea.hbm %s971_s4, %s537_s5  ;;  %s247_s10 = scalar_lea.vmem [#allocation8], %s526_s26 }
  0x33   : > { %273 = vmatpush.msra.mxu0 %v252_v4  ;;  %v278_v7 = vperm.slane %v249_v6, 0  ;;  %v356_v11 = vperm.slane %v249_v6, 1  ;;  %v382_v32 = vld [vmem:[#allocation7 + $0x10] sm:$0xff]  ;;  %401 = vmatpush.msra.mxu3 %v383_v31  ;;  %v303_v45 = vld [vmem:[#allocation7] sm:$0xff]  ;;  %s426_s21 = sshll.u32 %s247_s10, 4  ;;  %s428_s24 = sshll.u32 %s424_s9, 4  ;;  %s427_s21 = int_to_ptr.vmem [resolvable:$true] %s426_s21  ;;  %s429_s24 = int_to_ptr.hbm [resolvable:$true] %s428_s24 }
  0x34   : > { %351 = vmatpush.msra.mxu2 %v330_v2  ;;  %530 = vmatmul.msk.f32.vlgmr.msra.gmra.mxu0 %vm254_vm0, %v248_v0  ;;  %vm411_vm7 = vcmask 261248   ;;  %s414_s25 = scalar_lea.sflag [#allocation4], %s906_s14  ;;  %s716_s12 = sshra.s32 %s429_s24, 4  ;;  %s717_s12 = int_to_ptr.hbm [resolvable:$true] %s716_s12 }
  0x35   : > { %402 = vmatpush.msra.mxu3 %v382_v32  ;;  %322 = vmatpush.msra.mxu1 %v304_v44  ;;  %s718_s22 = scalar_lea.hbm %s717_s12, 8  ;;  %s722_s28 = scalar_lea.hbm %s971_s4, 16 }
  0x36   : > { %p719_p1 = scmp.ne.s32.totalorder %s717_s12, %s718_s22  ;;  %p723_p12 = scmp.lt.s32.totalorder %s717_s12, %s971_s4 }
  0x37   : > { %323 = vmatpush.msra.mxu1 %v303_v45  ;;  %p724_p7 = scmp.lt.s32.totalorder %s722_s28, %s718_s22 }
  0x38   : > { %p720_p3 = pnand %p719_p1, %p875_p4 }
  0x39   : > { %p725_p8 = por %p724_p7, %p723_p12 }
  0x3a   : > { %p721_p5 = pneg %p720_p3 }
  0x3c   : > { %p726_p9 = pnand %p725_p8, %p721_p5 }
  0xa3   : > { %v333_v5 = vpop.permute.xlu0 %332 }
  0xa4   : > { %533 = vmatmul.msk.f32.vlgmr.msra.gmra.mxu2 %vm254_vm0, %v333_v5 }
  0xb1   : > { %v275_v8 = vpop.f32.mrf.mxu0 }
  0xb2   : > { %v279_v9 = vsub.f32 %v275_v8, %v278_v7 }
  0xb4   : > { %v280_v10 = vsel %vm254_vm0, %v279_v9, -inf }
  0xb5   : > { %281 = vmax.xlane.f32.xlu1 %v280_v10 }
 0x127   : > { %v353_v12 = vpop.f32.mrf.mxu2 }
 0x128   : > { %v357_v13 = vsub.f32 %v353_v12, %v356_v11  ;;  %v282_v22 = vpop.xlane.xlu1 %281 }
 0x129   : > { %vm283_vm2 = vcmp.ge.f32.partialorder %v279_v9, %v282_v22 }
 0x12a   : > { %v358_v14 = vsel %vm254_vm0, %v357_v13, -inf  ;;  %v284_v24 = vsel %vm283_vm2, %v251_v16, 16 }
 0x12b   : > { %359 = vmax.xlane.f32.xlu0 %v358_v14  ;;  %v285_v27 = vsel %vm254_vm0, %v284_v24, 2147483647 }
 0x12c   : > { %v287_v29 = vshra.s32 %v285_v27, 16  ;;  %v286_v38 = vand.u32 65535, %v285_v27 }
 0x12e   : > { %v289_v30 = vcvt.s32.f32 %v287_v29  ;;  %v288_v42 = vcvt.s32.f32 %v286_v38 }
 0x19e   : > { %v360_v17 = vpop.xlane.xlu0 %359 }
 0x19f   : > { %vm361_vm1 = vcmp.ge.f32.partialorder %v357_v13, %v360_v17 }
 0x1a0   : > { %v362_v18 = vsel %vm361_vm1, %v251_v16, 16 }
 0x1a1   : > { %v363_v19 = vsel %vm254_vm0, %v362_v18, 2147483647 }
 0x1a2   : > { %v365_v20 = vshra.s32 %v363_v19, 16  ;;  %v364_v23 = vand.u32 65535, %v363_v19 }
 0x1a4   : > { %v367_v21 = vcvt.s32.f32 %v365_v20  ;;  %v366_v26 = vcvt.s32.f32 %v364_v23 }
 0x1a6   : > { %368 = vmin.xlane.f32.xlu1 %v367_v21 }
 0x219   : > { %v369_v25 = vpop.xlane.xlu1 %368 }
 0x21a   : > { %vm370_vm3 = vcmp.eq.f32.partialorder %v367_v21, %v369_v25  ;;  %v375_v33 = vcvt.f32.s32 %v369_v25 }
 0x21b   : > { %v371_v28 = vsel %vm370_vm3, %v366_v26, inf }
 0x21c   : > { %372 = vmin.xlane.f32.xlu2 %v371_v28  ;;  %v376_v35 = vshll.u32 %v375_v33, 16 }
 0x224   : > { %290 = vmin.xlane.f32.xlu2 %v289_v30 }
 0x28f   : > { %v373_v34 = vpop.xlane.xlu2 %372 }
 0x290   : > { %v374_v36 = vcvt.f32.s32 %v373_v34 }
 0x292   : > { %v377_v37 = vadd.s32 %v376_v35, %v374_v36 }
 0x294   : > { %vm378_vm4 = vcmp.eq.s32.totalorder %v251_v16, %v377_v37 }
 0x295   : > { %v534_v40 = vsel %vm378_vm4, 1.0, %v779_v39 }
 0x296   : > { %535 = vmatmul.msk.f32.vlgmr.msra.gmra.mxu3 %vm254_vm0, %v534_v40 }
 0x297   : > { %v291_v41 = vpop.xlane.xlu2 %290 }
 0x298   : > { %vm292_vm5 = vcmp.eq.f32.partialorder %v289_v30, %v291_v41  ;;  %v297_v46 = vcvt.f32.s32 %v291_v41 }
 0x299   : > { %v293_v43 = vsel %vm292_vm5, %v288_v42, inf }
 0x29a   : > { %294 = vmin.xlane.f32.xlu1 %v293_v43  ;;  %v298_v48 = vshll.u32 %v297_v46, 16 }
 0x30d   : > { %v295_v47 = vpop.xlane.xlu1 %294 }
 0x30e   : > { %v296_v49 = vcvt.f32.s32 %v295_v47 }
 0x310   : > { %v299_v50 = vadd.s32 %v298_v48, %v296_v49 }
 0x312   : > { %vm300_vm6 = vcmp.eq.s32.totalorder %v251_v16, %v299_v50 }
 0x313   : > { %v531_v51 = vsel %vm300_vm6, 1.0, %v779_v39 }
 0x314   : > { %532 = vmatmul.msk.f32.vlgmr.msra.gmra.mxu1 %vm254_vm0, %v531_v51 }
 0x319   : > { %v404_v52 = vpop.f32.mrf.mxu3 }
 0x31a   : > { %408 = vrot.lane.b32.xlu2 %v404_v52, %s780_s30 }
 0x374   : > { %v409_v54 = vpop.permute.xlu2 %408 }
 0x391   : > { %v325_v53 = vpop.f32.mrf.mxu1 }
 0x392   : > { %328 = vst.msk [vmem:[%s247_s10] sm:$0xff] %vm254_vm0, %v325_v53 }
 0x393   : > { %412 = vst.msk [vmem:[%s247_s10] sm:$0xff] %vm411_vm7, %v409_v54 }
 0x394   : > { %729 = shalt.err (!%p726_p9)
}
 0x395   : > { %550 = dma.vmem_to_hbm [thread:$0]  (%p875_p4), %s427_s21, 128, %s429_s24, %s414_s25  }
 0x396 PF: > { %s440_s14 = sand.u32 1, %s760_s15   ;;  %p978_p10 = scmp.ge.s32.totalorder %s772_s18, 2 }
 0x397   : > { %s441_s29 = scalar_lea.sflag [#allocation4], %s440_s14 }
 0x398   : > { %p564_p13 = pnand %p978_p10, %p879_p6 }
 0x39a   : > { %p565_p11 = pneg %p564_p13 }
 0x39c   : > { %755 = dma.done.wait (%p565_p11), %s441_s29, 128  }
 0x39d   : > { %757 = vsyncadd (%p565_p11), %s441_s29, 4294967168  ;;  %p18_p0 = scmp.ge.s32.totalorder %s849_s8, 4   ;;  %s979_s15 = smov %s764_s16 }
 0x39e   : > { %s980_s16 = smov %s768_s17  ;;  %s981_s17 = smov %s860_s11 }
 0x39f   : > { %s982_s18 = smov %s849_s8  ;;  %20 = sbr.rel (!%p18_p0) target bundleno = 6 (0x6), region = 91 }
 0x3a4   :  { %447 = vsyncpa [#allocation3], 1 }
 0x3a5   :  { %449 = vsyncpa [#allocation3 + $0x1], 1 }
 0x3a6   :  { %450 = vsyncpa [#allocation6], 1 }
 0x3a7   :  { %451 = vsyncpa [#allocation4], 1 }
 0x3a8   :  { %453 = vsyncpa [#allocation4 + $0x1], 1 }

</bundles_post_ra>
